<compile_context>
chip_gen: v7x
topology: tpu7x:2x2x1
jax: 0.10.0
libtpu: 0.0.40
codegen_flags: <defaults>
</compile_context>

<pallas_src>
import math
from functools import partial

import jax
import jax.numpy as jnp
import numpy as np
from jax.experimental import pallas as pl
from jax.experimental.pallas import tpu as pltpu

# Hyperparameters of ContrastiveLoss(tau_plus=0.1, beta=1.0, temperature=10, estimator=hard)
TAU_PLUS = 0.1
BETA = 1.0            # compile-time constant -> imp = exp(beta * log(neg)) == neg
TEMPERATURE = 10.0
COS_EPS = 1e-8        # torch.nn.functional.cosine_similarity default eps


def _vmem_capacity_bytes():
    try:
        return int(pltpu.get_tpu_info().vmem_capacity_bytes)
    except Exception:
        return None


_VMEM_CAP = _vmem_capacity_bytes()


def _loss_kernel(x1_ref, x2_ref, rhs_ref, partial_ref, *, b, tm):
    """One grid step: paired rows [t*tm, (t+1)*tm) of x_1 and x_2."""
    t = pl.program_id(0)
    inv_t = 1.0 / TEMPERATURE

    # One fused MXU matmul for both halves:
    #   LHS = [x1 tile rows ; x2 tile rows]  (2*tm, D_pad) bf16
    #   RHS = pre-transposed constant feature matrix (D_pad, 2B), columns [x2 | x1]
    lhs = jnp.concatenate([x1_ref[...], x2_ref[...]], axis=0)
    cos = jax.lax.dot_general(lhs, rhs_ref[...],
                              (((1,), (0,)), ((), ())),
                              preferred_element_type=jnp.float32)       # (2*tm, 2B)

    neg = jnp.exp(cos * inv_t)                 # >= e^{-1/T} -> reference's 1e-6 clamp is dead
    row_sum = jnp.sum(neg, axis=-1, keepdims=True)          # (2*tm, 1)
    row_sumsq = jnp.sum(neg * neg, axis=-1, keepdims=True)  # (2*tm, 1)

    # Positive block cos(x1_i, x2_j): columns [0, B) of the x1-rows half (lane offset 0).
    pos_cos = cos[:tm, :b]                      # (tm, B)
    pos = neg[:tm, :b]                          # exp(pos_cos / T)

    # Both halves exclude the same two entries per row: exp(1/T) (self column) and
    # d_i = exp(cos(x1_i, x2_i)/T) (paired column).  Extract d_i with one masked reduce
    # over the positive block; subtract analytically instead of a dense mask + selects.
    r0 = t * tm
    row_i = jax.lax.broadcasted_iota(jnp.int32, (tm, b), 0)
    col_i = jax.lax.broadcasted_iota(jnp.int32, (tm, b), 1)
    d = jnp.sum(jnp.where(col_i == row_i + r0, pos, 0.0),
                axis=-1, keepdims=True)                      # (tm, 1)

    e1 = math.exp(1.0 / TEMPERATURE)
    e2 = math.exp(2.0 / TEMPERATURE)
    n_sel = float(2 * b - 2)                    # negatives per row (B >= 2)

    s1, s2 = row_sum[:tm], row_sum[tm:]
    q1, q2 = row_sumsq[:tm], row_sumsq[tm:]
    # Hard estimator with beta == 1:  reweight = sum_sel(neg^2) * n_sel / sum_sel(neg)
    rw1 = (q1 - e2 - d * d) * n_sel / (s1 - e1 - d)
    rw2 = (q2 - e2 - d * d) * n_sel / (s2 - e1 - d)

    big_n = float(max(2 * b - 2, 2))
    ng_min = big_n * math.exp(-1.0 / TEMPERATURE)
    scale = 1.0 / (1.0 - TAU_PLUS)
    ng1 = jnp.maximum((rw1 - TAU_PLUS * big_n * pos) * scale, ng_min)
    ng2 = jnp.maximum((rw2 - TAU_PLUS * big_n * pos) * scale, ng_min)

    # log(pos/(pos+Ng)) = pos_cos/T - log(pos+Ng); ratio>=O(1/B) so reference's 1e-6 clamp
    # is dead (statically checked in the wrapper).  The reference duplicates pos for both
    # halves (cat([pos, pos])).
    total = jnp.sum(2.0 * pos_cos * inv_t - jnp.log(pos + ng1) - jnp.log(pos + ng2))
    tile_loss = -total / (2.0 * b * b)          # partial of -mean(log ratio)

    # Lane-dense (8,128) partial-loss block; wrapper reads element [0, 0] of each block.
    partial_ref[...] = jnp.full(partial_ref.shape, tile_loss, dtype=partial_ref.dtype)


def _pick_row_tile(b, temp_budget_bytes, max_tm):
    """Largest row tile (multiple of 8, divides B, <= max_tm) whose f32 temps fit budget."""
    for tm in (512, 256, 128, 64, 32, 16, 8):
        if tm > max_tm or b % tm != 0:
            continue
        if 10 * tm * (2 * b) * 4 <= temp_budget_bytes:
            return tm
    return 8   # only reached for extremely large B; smallest tile keeps VMEM bounded


@jax.jit
def contrastive_loss(x_1, x_2):
    b, d = x_1.shape
    if b % 8 != 0 or b < 8:
        # TODO(synk): pad + mask ragged batch sizes (B not a multiple of 8) instead of raising.
        raise NotImplementedError("ContrastiveLoss Pallas kernel needs batch_size % 8 == 0")
    if 2 * b - 2 > 100_000:
        # For such N the reference's ratio >= 1e-6 clamp could fire; the analytic path
        # assumes it is dead.
        raise NotImplementedError("batch too large for dead-clamp assumption")

    two_b = 2 * b
    d_pad = ((d + 127) // 128) * 128            # lane / MXU contraction width

    # Generation-aware tile and VMEM budgets.
    small_vmem = _VMEM_CAP is not None and _VMEM_CAP < 100 * (1 << 20)
    if small_vmem:                              # v7x-class: 64 MiB/TC, 2 TensorCores
        temp_budget, limit_cap = 14 << 20, min(48 << 20, (_VMEM_CAP * 3) // 4)
        max_tm = (b // 2) if b >= 16 else b     # >=2 tiles so both cores get work
    elif _VMEM_CAP is not None:                 # v5e / v6e: 128 MiB, single TC -> few grid steps
        temp_budget, limit_cap = 48 << 20, 100 << 20
        max_tm = b
    else:                                       # unknown: conservative
        temp_budget, limit_cap = 24 << 20, 64 << 20
        max_tm = b
    tm = _pick_row_tile(b, temp_budget, max_tm)
    num_tiles = b // tm

    # Normalize each view separately (no (2B, D) f32 concat in HBM), zero-pad D.
    # NOTE: clamps each row norm at eps independently; torch clamps the product |a||b|,
    # which only differs for near-zero feature vectors.
    def norm(x):
        xf = x.astype(jnp.float32)
        ss = jnp.sum(xf * xf, axis=-1, keepdims=True)
        xn = xf * jax.lax.rsqrt(jnp.maximum(ss, COS_EPS * COS_EPS))
        return jnp.pad(xn, ((0, 0), (0, d_pad - d))).astype(jnp.bfloat16)

    x1n = norm(x_1)
    x2n = norm(x_2)
    # Pre-transposed constant RHS, columns ordered [x2 | x1] so the positive block sits at
    # lane offset 0 of the x1-rows result.
    rhs = jnp.concatenate([x2n.T, x1n.T], axis=1)           # (D_pad, 2B) bf16

    # VMEM budget from the actual footprint (bounded by the row tiling).
    vmem_bytes = (2 * d_pad * two_b * 2          # constant RHS (default double-buffered)
                  + 2 * 2 * tm * d_pad * 2       # two row-block inputs, double-buffered, bf16
                  + 2 * 2 * tm * d_pad * 2       # in-kernel stacked LHS + headroom
                  + 10 * tm * two_b * 4          # f32 cos/neg/pos temporaries
                  + 2 * 8 * 128 * 4              # partial-loss output blocks
                  + (2 << 20))
    vmem_limit = int(min(limit_cap, max(16 << 20, vmem_bytes)))

    partials = pl.pallas_call(
        partial(_loss_kernel, b=b, tm=tm),
        out_shape=jax.ShapeDtypeStruct((num_tiles * 8, 128), jnp.float32),
        grid=(num_tiles,),
        in_specs=[
            pl.BlockSpec((tm, d_pad), lambda t: (t, 0)),     # x1 rows of tile t
            pl.BlockSpec((tm, d_pad), lambda t: (t, 0)),     # matching x2 rows
            # Constant index map -> not re-fetched per step; only the spare double buffer
            # costs VMEM (accounted for above).
            # TODO(synk): single-buffer this operand (pipeline_mode=pl.Buffered(1)) once
            # verified on the target jax version.
            pl.BlockSpec((d_pad, two_b), lambda t: (0, 0)),
        ],
        out_specs=pl.BlockSpec((8, 128), lambda t: (t, 0)),
        compiler_params=pltpu.CompilerParams(
            dimension_semantics=("parallel",),
            vmem_limit_bytes=vmem_limit),
    )(x1n, x2n, rhs)

    # Each tile broadcast its partial across its (8,128) block; pick one lane per tile and sum.
    return jnp.sum(partials.reshape(num_tiles, 8, 128)[:, 0, 0])


def reference_loss(x_1, x_2):
    """Plain numpy port of the PyTorch forward (hard estimator) for verification."""
    x_1 = np.asarray(x_1, dtype=np.float64)
    x_2 = np.asarray(x_2, dtype=np.float64)
    b = x_1.shape[0]
    out = np.concatenate([x_1, x_2], axis=0)

    def cos_sim(a, c):
        w12 = np.sum(a * c, axis=-1)
        w1 = np.sum(a * a, axis=-1)
        w2 = np.sum(c * c, axis=-1)
        return w12 / np.sqrt(np.maximum(w1 * w2, COS_EPS * COS_EPS))

    neg = np.exp(cos_sim(out[:, None, :], out[None, :, :]) / TEMPERATURE)
    mask = np.ones((b, 2 * b), dtype=bool)
    if b != 1:
        for i in range(b):
            mask[i, i] = False
            mask[i, i + b] = False
    else:
        mask[0, 1] = False
    mask = np.concatenate([mask, mask], axis=0)
    neg = neg[mask].reshape(2 * b, -1)
    pos = np.exp(cos_sim(x_1[:, None, :], x_2[None, :, :]) / TEMPERATURE)
    pos = np.concatenate([pos, pos], axis=0)

    N = max(b * 2 - 2, 2)
    neg = np.maximum(neg, 1e-6)
    imp = np.exp(BETA * np.log(neg))
    reweight_neg = (imp * neg).sum(axis=-1, keepdims=True) / imp.mean(axis=-1, keepdims=True)
    Ng = (-TAU_PLUS * N * pos + reweight_neg) / (1.0 - TAU_PLUS)
    Ng = np.maximum(Ng, N * np.e ** (-1.0 / TEMPERATURE))
    ratio = np.maximum(pos / (pos + Ng), 1e-6)
    return float(-np.log(ratio).mean())


if __name__ == "__main__":
    key = jax.random.PRNGKey(0)
    k1, k2 = jax.random.split(key)
    B, D = 8, 32
    x_1 = jax.random.normal(k1, (B, D), dtype=jnp.float32)
    x_2 = jax.random.normal(k2, (B, D), dtype=jnp.float32)

    loss = jax.block_until_ready(contrastive_loss(x_1, x_2))
    ref = reference_loss(x_1, x_2)

    assert np.isfinite(float(loss)), "NaN loss"
    assert abs(float(loss) - ref) < 5e-3, (float(loss), ref)
    print("KERNEL_OK")
</pallas_src>

<mosaic_0001>
module attributes {stable_mosaic.version = 11 : i64} {
  func.func @_loss_kernel(%arg0: i32, %arg1: memref<8x128xbf16, #tpu.memory_space<vmem>>, %arg2: memref<8x128xbf16, #tpu.memory_space<vmem>>, %arg3: memref<128x16xbf16, #tpu.memory_space<vmem>>, %arg4: memref<8x128xf32, #tpu.memory_space<vmem>>) attributes {dimension_semantics = [#tpu.dimension_semantics<parallel>], iteration_bounds = array<i64: 1>, scalar_prefetch = 0 : i64, scratch_operands = 0 : i64, tpu.core_type = #tpu.core_type<tc>, window_params = [{transform_indices = @transform_0, window_bounds = array<i64: 8, 128>}, {transform_indices = @transform_1, window_bounds = array<i64: 8, 128>}, {pipeline_mode = #tpu.pipeline_mode<synchronous>, transform_indices = @transform_2, window_bounds = array<i64: 128, 16>}, {transform_indices = @transform_3, window_bounds = array<i64: 8, 128>}]} {
    %c0 = arith.constant 0 : index
    %c0_0 = arith.constant 0 : index
    %0 = vector.load %arg1[%c0, %c0_0] : memref<8x128xbf16, #tpu.memory_space<vmem>>, vector<8x128xbf16>
    %c0_1 = arith.constant 0 : index
    %c0_2 = arith.constant 0 : index
    %1 = vector.load %arg2[%c0_1, %c0_2] : memref<8x128xbf16, #tpu.memory_space<vmem>>, vector<8x128xbf16>
    %2 = tpu.concatenate %0, %1 in 0 : vector<8x128xbf16>, vector<8x128xbf16> -> vector<16x128xbf16>
    %c0_3 = arith.constant 0 : index
    %c0_4 = arith.constant 0 : index
    %3 = vector.load %arg3[%c0_3, %c0_4] : memref<128x16xbf16, #tpu.memory_space<vmem>>, vector<128x16xbf16>
    %cst = arith.constant dense<0.000000e+00> : vector<16x16xf32>
    %4 = tpu.matmul %2, %3, %cst {dimension_numbers = #tpu.dot_dimension_numbers<[1], [0], [0], [1], [0, 0, 1, 1], [], []>} : vector<16x128xbf16>, vector<128x16xbf16>, vector<16x16xf32> -> vector<16x16xf32>
    %cst_5 = arith.constant 1.000000e-01 : f32
    %5 = vector.broadcast %cst_5 : f32 to vector<16x16xf32>
    %6 = arith.mulf %4, %5 : vector<16x16xf32>
    %7 = math.exp %6 : vector<16x16xf32>
    %cst_6 = arith.constant dense<0.000000e+00> : vector<16xf32>
    %8 = vector.multi_reduction <add>, %7, %cst_6 [1] : vector<16x16xf32> to vector<16xf32>
    %9 = vector.shape_cast %8 : vector<16xf32> to vector<16x1xf32>
    %10 = arith.mulf %7, %7 : vector<16x16xf32>
    %cst_7 = arith.constant dense<0.000000e+00> : vector<16xf32>
    %11 = vector.multi_reduction <add>, %10, %cst_7 [1] : vector<16x16xf32> to vector<16xf32>
    %12 = vector.shape_cast %11 : vector<16xf32> to vector<16x1xf32>
    %13 = vector.extract_strided_slice %4 {offsets = [0, 0], sizes = [8, 8], strides = [1, 1]} : vector<16x16xf32> to vector<8x8xf32>
    %14 = vector.extract_strided_slice %7 {offsets = [0, 0], sizes = [8, 8], strides = [1, 1]} : vector<16x16xf32> to vector<8x8xf32>
    %c8_i32 = arith.constant 8 : i32
    %15 = arith.muli %arg0, %c8_i32 : i32
    %16 = tpu.iota {dimensions = array<i32: 0>} : vector<8x8xi32>
    %17 = tpu.iota {dimensions = array<i32: 1>} : vector<8x8xi32>
    %18 = vector.broadcast %15 : i32 to vector<8x8xi32>
    %19 = arith.addi %16, %18 : vector<8x8xi32>
    %20 = arith.cmpi eq, %17, %19 : vector<8x8xi32>
    %cst_8 = arith.constant 0.000000e+00 : f32
    %21 = vector.broadcast %cst_8 : f32 to vector<8x8xf32>
    %22 = arith.select %20, %14, %21 : vector<8x8xi1>, vector<8x8xf32>
    %cst_9 = arith.constant dense<0.000000e+00> : vector<8xf32>
    %23 = vector.multi_reduction <add>, %22, %cst_9 [1] : vector<8x8xf32> to vector<8xf32>
    %24 = vector.shape_cast %23 : vector<8xf32> to vector<8x1xf32>
    %25 = vector.extract_strided_slice %9 {offsets = [0, 0], sizes = [8, 1], strides = [1, 1]} : vector<16x1xf32> to vector<8x1xf32>
    %26 = vector.extract_strided_slice %9 {offsets = [8, 0], sizes = [8, 1], strides = [1, 1]} : vector<16x1xf32> to vector<8x1xf32>
    %27 = vector.extract_strided_slice %12 {offsets = [0, 0], sizes = [8, 1], strides = [1, 1]} : vector<16x1xf32> to vector<8x1xf32>
    %28 = vector.extract_strided_slice %12 {offsets = [8, 0], sizes = [8, 1], strides = [1, 1]} : vector<16x1xf32> to vector<8x1xf32>
    %cst_10 = arith.constant 1.22140276 : f32
    %29 = vector.broadcast %cst_10 : f32 to vector<8x1xf32>
    %30 = arith.subf %27, %29 : vector<8x1xf32>
    %31 = arith.mulf %24, %24 : vector<8x1xf32>
    %32 = arith.subf %30, %31 : vector<8x1xf32>
    %cst_11 = arith.constant 1.400000e+01 : f32
    %33 = vector.broadcast %cst_11 : f32 to vector<8x1xf32>
    %34 = arith.mulf %32, %33 : vector<8x1xf32>
    %cst_12 = arith.constant 1.10517097 : f32
    %35 = vector.broadcast %cst_12 : f32 to vector<8x1xf32>
    %36 = arith.subf %25, %35 : vector<8x1xf32>
    %37 = arith.subf %36, %24 : vector<8x1xf32>
    %38 = arith.divf %34, %37 : vector<8x1xf32>
    %cst_13 = arith.constant 1.22140276 : f32
    %39 = vector.broadcast %cst_13 : f32 to vector<8x1xf32>
    %40 = arith.subf %28, %39 : vector<8x1xf32>
    %41 = arith.mulf %24, %24 : vector<8x1xf32>
    %42 = arith.subf %40, %41 : vector<8x1xf32>
    %cst_14 = arith.constant 1.400000e+01 : f32
    %43 = vector.broadcast %cst_14 : f32 to vector<8x1xf32>
    %44 = arith.mulf %42, %43 : vector<8x1xf32>
    %cst_15 = arith.constant 1.10517097 : f32
    %45 = vector.broadcast %cst_15 : f32 to vector<8x1xf32>
    %46 = arith.subf %26, %45 : vector<8x1xf32>
    %47 = arith.subf %46, %24 : vector<8x1xf32>
    %48 = arith.divf %44, %47 : vector<8x1xf32>
    %cst_16 = arith.constant 1.400000e+00 : f32
    %49 = vector.broadcast %cst_16 : f32 to vector<8x8xf32>
    %50 = arith.mulf %49, %14 : vector<8x8xf32>
    %51 = vector.broadcast %38 : vector<8x1xf32> to vector<8x8xf32>
    %52 = arith.subf %51, %50 : vector<8x8xf32>
    %cst_17 = arith.constant 1.11111116 : f32
    %53 = vector.broadcast %cst_17 : f32 to vector<8x8xf32>
    %54 = arith.mulf %52, %53 : vector<8x8xf32>
    %cst_18 = arith.constant 12.6677237 : f32
    %55 = vector.broadcast %cst_18 : f32 to vector<8x8xf32>
    %56 = arith.maximumf %54, %55 : vector<8x8xf32>
    %cst_19 = arith.constant 1.400000e+00 : f32
    %57 = vector.broadcast %cst_19 : f32 to vector<8x8xf32>
    %58 = arith.mulf %57, %14 : vector<8x8xf32>
    %59 = vector.broadcast %48 : vector<8x1xf32> to vector<8x8xf32>
    %60 = arith.subf %59, %58 : vector<8x8xf32>
    %cst_20 = arith.constant 1.11111116 : f32
    %61 = vector.broadcast %cst_20 : f32 to vector<8x8xf32>
    %62 = arith.mulf %60, %61 : vector<8x8xf32>
    %cst_21 = arith.constant 12.6677237 : f32
    %63 = vector.broadcast %cst_21 : f32 to vector<8x8xf32>
    %64 = arith.maximumf %62, %63 : vector<8x8xf32>
    %cst_22 = arith.constant 2.000000e+00 : f32
    %65 = vector.broadcast %cst_22 : f32 to vector<8x8xf32>
    %66 = arith.mulf %65, %13 : vector<8x8xf32>
    %cst_23 = arith.constant 1.000000e-01 : f32
    %67 = vector.broadcast %cst_23 : f32 to vector<8x8xf32>
    %68 = arith.mulf %66, %67 : vector<8x8xf32>
    %69 = arith.addf %14, %56 : vector<8x8xf32>
    %70 = math.log %69 : vector<8x8xf32>
    %71 = arith.subf %68, %70 : vector<8x8xf32>
    %72 = arith.addf %14, %64 : vector<8x8xf32>
    %73 = math.log %72 : vector<8x8xf32>
    %74 = arith.subf %71, %73 : vector<8x8xf32>
    %75 = vector.shape_cast %74 : vector<8x8xf32> to vector<1x8x8xf32>
    %cst_24 = arith.constant dense<0.000000e+00> : vector<1xf32>
    %76 = vector.multi_reduction <add>, %75, %cst_24 [1, 2] : vector<1x8x8xf32> to vector<1xf32>
    %77 = vector.shape_cast %76 : vector<1xf32> to vector<1x1x1xf32>
    %78 = vector.extract %77[0, 0, 0] : f32 from vector<1x1x1xf32>
    %cst_25 = arith.constant 0.000000e+00 : f32
    %79 = arith.subf %cst_25, %78 : f32
    %cst_26 = arith.constant 1.280000e+02 : f32
    %80 = arith.divf %79, %cst_26 : f32
    %81 = vector.broadcast %80 : f32 to vector<8x128xf32>
    %c0_27 = arith.constant 0 : index
    %c0_28 = arith.constant 0 : index
    %82 = vector.load %arg4[%c0_27, %c0_28] : memref<8x128xf32, #tpu.memory_space<vmem>>, vector<8x128xf32>
    tpu.vector_store %arg4[%c0_27, %c0_28], %81 {strides = array<i32>} : memref<8x128xf32, #tpu.memory_space<vmem>>, vector<8x128xf32>,
    return
  }
  func.func @transform_0(%arg0: i32) -> (i32, i32) {
    %c0_i32 = arith.constant 0 : i32
    %c0_i32_0 = arith.constant 0 : i32
    return %arg0, %c0_i32 : i32, i32
  }
  func.func @transform_1(%arg0: i32) -> (i32, i32) {
    %c0_i32 = arith.constant 0 : i32
    %c0_i32_0 = arith.constant 0 : i32
    return %arg0, %c0_i32 : i32, i32
  }
  func.func @transform_2(%arg0: i32) -> (i32, i32) {
    %c0_i32 = arith.constant 0 : i32
    %c0_i32_0 = arith.constant 0 : i32
    %c0_i32_1 = arith.constant 0 : i32
    return %c0_i32, %c0_i32_0 : i32, i32
  }
  func.func @transform_3(%arg0: i32) -> (i32, i32) {
    %c0_i32 = arith.constant 0 : i32
    %c0_i32_0 = arith.constant 0 : i32
    return %arg0, %c0_i32 : i32, i32
  }
}

</mosaic_0001>

<bundles_post_ra>
// kernel: contrastive_loss.1
= control target key start
LH: loop header
LB: loop body
LE: loop exit
PB: predicated region body
PF: predicated region fallthrough
CT: control target
= control target key end

     0   :  { %v283_v0 = vmov 0.0   ;;  %vm284_vm0 = vmmov 0   ;;  %vm20_vm1 = vcmask 1043456   ;;  %v152_v20 = vlaneseq  ;;  %s348_s2 = inlined_call_operand.vmem [shape: bf16[128,16], index: 2, kind: input, shape index: {}]   ;;  %s349_s1 = inlined_call_operand.vmem [shape: bf16[8,128], index: 1, kind: input, shape index: {}]   ;;  %s350_s0 = inlined_call_operand.vmem [shape: bf16[8,128], index: 0, kind: input, shape index: {}]   ;;  %s351_s3 = inlined_call_operand.vmem [shape: f32[8,128], index: 3, kind: output, shape index: {}]  }
   0x1   :  { %238 = vmatprep.subr.bf16.mxu0 %v283_v0  ;;  %v262_v1 = vld [vmem:[%s348_s2] sm:$0xff]   ;;  %254 = vmatprep.mubr.msk.bf16.mxu0 %vm284_vm0, %v283_v0  ;;  %v263_v2 = vld [vmem:[%s348_s2 + $0x8] sm:$0xff]   ;;  %v264_v3 = vld [vmem:[%s348_s2 + $0x10] sm:$0xff]   ;;  %vm136_vm2 = vcmask 130048   ;;  %vm160_vm4 = vcmask 64512  }
   0x2   :  { %239 = vmatpush3.bf16.msra.mxu0 %v262_v1  ;;  %v265_v4 = vld [vmem:[%s348_s2 + $0x18] sm:$0xff]   ;;  %v266_v5 = vld [vmem:[%s348_s2 + $0x20] sm:$0xff]   ;;  %v267_v6 = vld [vmem:[%s348_s2 + $0x28] sm:$0xff]   ;;  %v153_v21 = vshrl.u32 %v152_v20, 7  ;;  %v155_v22 = vand.u32 127, %v152_v20 }
   0x3   :  { %240 = vmatprep.subr.bf16.mxu0 %v283_v0  ;;  %v268_v7 = vld [vmem:[%s348_s2 + $0x30] sm:$0xff]   ;;  %v269_v8 = vld [vmem:[%s348_s2 + $0x38] sm:$0xff]   ;;  %v270_v9 = vld [vmem:[%s349_s1] ss:$0 sps:$4 sm:$0xff]  }
   0x4   :  { %v15_v10 = vld [vmem:[%s350_s0] sm:$0xf]  ;;  %vm158_vm3 = vcmp.eq.s32.totalorder %v155_v22, %v153_v21 }
   0x5   :  { %v23_v11 = vsel %vm20_vm1, %v15_v10, %v270_v9 }
   0x6   :  { %241 = vmatpush3.bf16.msra.mxu0 %v263_v2 }
   0x7   :  { %242 = vmatprep.subr.bf16.mxu0 %v283_v0 }
   0xa   :  { %243 = vmatpush3.bf16.msra.mxu0 %v264_v3 }
   0xb   :  { %244 = vmatprep.subr.bf16.mxu0 %v283_v0 }
   0xe   :  { %245 = vmatpush3.bf16.msra.mxu0 %v265_v4 }
   0xf   :  { %246 = vmatprep.subr.bf16.mxu0 %v283_v0 }
  0x12   :  { %247 = vmatpush3.bf16.msra.mxu0 %v266_v5 }
  0x13   :  { %248 = vmatprep.subr.bf16.mxu0 %v283_v0 }
  0x16   :  { %249 = vmatpush3.bf16.msra.mxu0 %v267_v6 }
  0x17   :  { %250 = vmatprep.subr.bf16.mxu0 %v283_v0 }
  0x1a   :  { %251 = vmatpush3.bf16.msra.mxu0 %v268_v7 }
  0x1b   :  { %252 = vmatprep.subr.bf16.mxu0 %v283_v0 }
  0x1e   :  { %253 = vmatpush3.bf16.msra.mxu0 %v269_v8 }
  0x21   :  { %255 = vmatmul.mubr.bf16.vlgmr.msra.gmra.mrb[0].mxu0 %v23_v11 }
  0xf4   :  { %v335_v12 = vpop.f32.mrb[0].mxu0 }
  0xf5   :  { %v130_v13 = vmul.f32 0.1, %v335_v12  ;;  %v256_v14 = vpop.f32.mrb[1].mxu0  ;;  %v186_v62 = vmul.f32 2.0, %v335_v12 }
  0xf6   :  { %v126_v15 = vpop.f32.mrb[2].mxu0 }
  0xf7   :  { %v132_v16 = vmul.f32 1.442695, %v130_v13  ;;  %v131_v17 = vmul.f32 0.1, %v126_v15  ;;  %v257_v18 = vpop.f32.mrb[3].mxu0 }
  0xf8   :  { %v187_v1 = vmul.f32 0.1, %v186_v62 }
  0xf9   :  { %271 = vpow2.f32 %v132_v16  ;;  %v134_v19 = vmul.f32 1.442695, %v131_v17 }
  0xfb   :  { %273 = vpow2.f32 %v134_v19 }
 0x103   :  { %v272_v23 = vpop.eup %271 }
 0x104   :  { %v137_v24 = vsel %vm136_vm2, %v272_v23, 0.0  ;;  %v159_v25 = vsel %vm158_vm3, %v272_v23, 0.0  ;;  %v143_v28 = vmul.f32 %v272_v23, %v272_v23  ;;  %v179_v49 = vmul.f32 1.4, %v272_v23 }
 0x105   :  { %v274_v26 = vpop.eup %273  ;;  %138 = vadd.xlane.f32.xlu0 %v137_v24  ;;  %v161_v27 = vsel %vm160_vm4, %v159_v25, 0.0 }
 0x106   :  { %162 = vadd.xlane.f32.xlu1 %v161_v27  ;;  %v140_v29 = vsel %vm136_vm2, %v274_v26, 0.0  ;;  %v144_v30 = vmul.f32 %v274_v26, %v274_v26  ;;  %v145_v31 = vsel %vm136_vm2, %v143_v28, 0.0 }
 0x108   :  { %v148_v32 = vsel %vm136_vm2, %v144_v30, 0.0 }
 0x109   :  { %141 = vadd.xlane.f32.xlu0 %v140_v29 }
 0x10a   :  { %146 = vadd.xlane.f32.xlu1 %v145_v31 }
 0x10d   :  { %149 = vadd.xlane.f32.xlu0 %v148_v32 }
 0x192   :  { %v139_v33 = vpop.xlane.xlu0 %138 }
 0x193   :  { %v226_v34 = vadd.f32 -1.105171, %v139_v33  ;;  %v163_v35 = vpop.xlane.xlu1 %162 }
 0x194   :  { %v165_v42 = vmul.f32 %v163_v35, %v163_v35 }
 0x195   :  { %v169_v36 = vsub.f32 %v226_v34, %v163_v35 }
 0x196   :  { %v142_v37 = vpop.xlane.xlu0 %141 }
 0x197   :  { %275 = vrcp.f32 %v169_v36  ;;  %v228_v38 = vadd.f32 -1.105171, %v142_v37  ;;  %v147_v39 = vpop.xlane.xlu1 %146 }
 0x198   :  { %v225_v40 = vadd.f32 -1.2214028, %v147_v39 }
 0x199   :  { %v176_v41 = vsub.f32 %v228_v38, %v163_v35 }
 0x19a   :  { %v150_v43 = vpop.xlane.xlu0 %149  ;;  %v166_v44 = vsub.f32 %v225_v40, %v165_v42 }
 0x19b   :  { %277 = vrcp.f32 %v176_v41  ;;  %v227_v45 = vadd.f32 -1.2214028, %v150_v43 }
 0x19c   :  { %v167_v46 = vmul.f32 14.0, %v166_v44 }
 0x19d   :  { %v173_v47 = vsub.f32 %v227_v45, %v165_v42 }
 0x19f   :  { %v174_v52 = vmul.f32 14.0, %v173_v47 }
 0x1a1   :  { %v276_v48 = vpop.eup %275 }
 0x1a2   :  { %v171_v50 = vmul.f32 %v276_v48, %v167_v46 }
 0x1a4   :  { %v180_v51 = vsub.f32 %v171_v50, %v179_v49 }
 0x1a5   :  { %v278_v53 = vpop.eup %277 }
 0x1a6   :  { %v181_v54 = vmul.f32 1.1111112, %v180_v51  ;;  %v178_v55 = vmul.f32 %v278_v53, %v174_v52 }
 0x1a8   :  { %v182_v56 = vmax.f32 %v181_v54, 12.667724  ;;  %v183_v57 = vsub.f32 %v178_v55, %v179_v49 }
 0x1aa   :  { %v184_v58 = vmul.f32 1.1111112, %v183_v57  ;;  %v188_v59 = vadd.f32 %v272_v23, %v182_v56 }
 0x1ac   :  { %v185_v60 = vmax.f32 %v184_v58, 12.667724  ;;  %279 = vlog2.f32 %v188_v59 }
 0x1ae   :  { %v192_v61 = vadd.f32 %v272_v23, %v185_v60 }
 0x1b0   :  { %281 = vlog2.f32 %v192_v61 }
 0x1b6   :  { %v280_v63 = vpop.eup %279 }
 0x1b7   :  { %v190_v0 = vmul.f32 0.6931472, %v280_v63 }
 0x1b9   :  { %v191_v3 = vsub.f32 %v187_v1, %v190_v0 }
 0x1ba   :  { %v282_v2 = vpop.eup %281 }
 0x1bb   :  { %v194_v4 = vmul.f32 0.6931472, %v282_v2 }
 0x1bd   :  { %v195_v5 = vsub.f32 %v191_v3, %v194_v4 }
 0x1bf   :  { %v196_v6 = vsel %vm160_vm4, %v195_v5, 0.0 }
 0x1c0   :  { %197 = vadd.xlane.f32.xlu1 %v196_v6 }
 0x24d   :  { %v198_v7 = vpop.xlane.xlu1 %197 }
 0x24e   :  { %v199_v8 = vrot.slane %v198_v7, 4 }
 0x250   :  { %v200_v9 = vadd.f32 %v199_v8, %v198_v7 }
 0x252   :  { %v201_v10 = vrot.slane %v200_v9, 2 }
 0x254   :  { %v202_v11 = vadd.f32 %v201_v10, %v200_v9 }
 0x256   :  { %v203_v13 = vrot.slane %v202_v11, 1 }
 0x258   :  { %v204_v14 = vadd.f32 %v203_v13, %v202_v11 }
 0x25a   :  { %258 = vpush %v204_v14 }
 0x28b   :  { %s259_s0 = spop %258 }
 0x28c   :  { %s206_s1 = ssub.f32 0.0, %s259_s0 }
 0x28e   :  { %s209_s2 = smul.f32 0.0078125, %s206_s1 }
 0x290   :  { %v210_v12 = vstv %s209_s2 }
 0x291   :  { %211 = vst [vmem:[%s351_s3] sm:$0xff] %v210_v12 }

</bundles_post_ra>
